<compile_context>
chip_gen: v7x
topology: tpu7x:2x2x1
jax: 0.10.0
libtpu: 0.0.40
codegen_flags: <defaults>
</compile_context>

<pallas_src>
import jax
import jax.numpy as jnp
from jax import lax
from jax.experimental import pallas as pl
from jax.experimental.pallas import tpu as pltpu


_LANE = 128
_SUBLANE = 8
_SMALL_PROBLEM_BYTES = 512 * 1024      # below this, plain XLA wins


def _round_up(x: int, n: int) -> int:
    return ((x + n - 1) // n) * n


def _round_down(x: int, n: int) -> int:
    return (x // n) * n


def _target_block_bytes() -> int:
    """Per-buffer x-block target: bigger on v7x so the fixed ~0.35us per-step
    overhead stays <10% of each block's DMA time at ~3.2 TB/s HBM."""
    try:
        kind = jax.devices()[0].device_kind.lower()
    except Exception:  # pragma: no cover - defensive
        kind = ""
    if "v7" in kind:
        return 8 * 1024 * 1024
    return 4 * 1024 * 1024


def _decoder_kernel(x_ref, w_ref, b_ref, ot_ref):
    # x_ref : (TM, D)   w_ref : (O, D)   b_ref : (O, 1)   ot_ref : (O, TM)
    # out^T = W @ x^T (contract D on both operands) -> lane-dense (O, TM) store.
    acc = lax.dot_general(
        w_ref[...], x_ref[...],
        dimension_numbers=(((1,), (1,)), ((), ())),
        preferred_element_type=jnp.float32)
    ot_ref[...] = (acc + b_ref[...]).astype(ot_ref.dtype)


def _choose_tile(m: int, d_model: int, itemsize: int) -> int:
    """Row tile: multiple of 128, sized by (lane-padded) block bytes, clamped
    so the parallel grid axis has >= 2 steps when M allows it."""
    d_pad = _round_up(max(d_model, 1), _LANE)
    bytes_per_row = itemsize * d_pad            # real VMEM footprint per x row
    tm = max(_LANE, _round_down(_target_block_bytes() // bytes_per_row, _LANE))
    m_ceil = _round_up(max(m, 1), _LANE)
    tm = min(tm, m_ceil)
    if m_ceil >= 2 * _LANE:
        # Ensure >= 2 grid iterations so both v7x TensorCores get work.
        tm = min(tm, _round_up(pl.cdiv(m, 2), _LANE))
    return tm


def physics_decoder_forward(latent_state: jax.Array,
                            weight: jax.Array,
                            bias: jax.Array) -> jax.Array:
    """latent_state: (..., d_model); weight: (out_dim, d_model); bias: (out_dim,)."""
    *lead, d_model = latent_state.shape
    out_dim = weight.shape[0]
    m = 1
    for s in lead:
        m *= s

    itemsize = jnp.dtype(latent_state.dtype).itemsize

    # Small-problem fallback: custom-call + transpose overhead dominates the
    # few-hundred-FLOP math; XLA's fused path is strictly faster there.
    if m * d_model * itemsize < _SMALL_PROBLEM_BYTES:
        out = latent_state @ weight.T + bias
        return out.astype(latent_state.dtype)

    x = latent_state.reshape(m, d_model)
    b_col = bias.reshape(out_dim, 1).astype(jnp.float32)   # broadcasts over lanes

    tm = _choose_tile(m, d_model, itemsize)
    grid = (pl.cdiv(m, tm),)                                # no padding of x

    # Explicit scoped-VMEM limit from the lane/sublane-padded footprint:
    # 2x double-buffered x blocks + 2x output blocks + resident W/bias + slack.
    d_pad = _round_up(d_model, _LANE)
    x_block_bytes = itemsize * tm * d_pad
    o_block_bytes = itemsize * _round_up(out_dim, _SUBLANE) * tm
    w_bytes = jnp.dtype(weight.dtype).itemsize * _round_up(out_dim, _SUBLANE) * d_pad
    total = 2 * x_block_bytes + 2 * o_block_bytes + 2 * w_bytes + (1 << 20)
    vmem_limit = int(min(max(total + (2 << 20), 16 << 20), 30 << 20))

    cost = pl.CostEstimate(
        flops=2 * m * d_model * out_dim,
        transcendentals=0,
        bytes_accessed=int(m * d_model * itemsize + w_bytes + m * out_dim * itemsize))

    out_t = pl.pallas_call(
        _decoder_kernel,
        out_shape=jax.ShapeDtypeStruct((out_dim, m), latent_state.dtype),
        grid_spec=pl.GridSpec(
            grid=grid,
            in_specs=[
                pl.BlockSpec((tm, d_model), lambda i: (i, 0)),        # x row tile
                pl.BlockSpec((out_dim, d_model), lambda i: (0, 0)),   # W resident
                pl.BlockSpec((out_dim, 1), lambda i: (0, 0)),         # bias resident
            ],
            out_specs=pl.BlockSpec((out_dim, tm), lambda i: (0, i)),  # lane-dense
        ),
        compiler_params=pltpu.CompilerParams(
            dimension_semantics=("parallel",),     # v7x: shard row tiles over 2 TCs
            vmem_limit_bytes=vmem_limit),
        cost_estimate=cost,
    )(x, weight, b_col)

    out = out_t[:, :m].T                           # never transpose dead columns
    return out.reshape(*lead, out_dim)


if __name__ == "__main__":
    key = jax.random.PRNGKey(0)
    k_x, k_w, k_b, k_x2, k_w2, k_b2 = jax.random.split(key, 6)
    out_dim = 3

    # --- Case 1: toy shape implied by the module (small-problem XLA path). ---
    batch, seq, d_model = 2, 8, 32
    latent_state = jax.random.normal(k_x, (batch, seq, d_model), dtype=jnp.float32)
    weight = jax.random.normal(k_w, (out_dim, d_model), dtype=jnp.float32) * 0.05
    bias = jax.random.normal(k_b, (out_dim,), dtype=jnp.float32) * 0.05

    out_small = jax.block_until_ready(
        physics_decoder_forward(latent_state, weight, bias))
    ref_small = latent_state @ weight.T + bias
    assert out_small.shape == (batch, seq, out_dim)
    assert jnp.allclose(out_small, ref_small, atol=1e-5, rtol=1e-5)

    # --- Case 2: larger shape that exercises the Pallas kernel, with a
    #     partial final row tile (M = 2*1000 is not a multiple of TM). ---
    batch2, seq2, d_model2 = 2, 1000, 256
    latent2 = jax.random.normal(k_x2, (batch2, seq2, d_model2), dtype=jnp.float32)
    weight2 = jax.random.normal(k_w2, (out_dim, d_model2), dtype=jnp.float32) * 0.05
    bias2 = jax.random.normal(k_b2, (out_dim,), dtype=jnp.float32) * 0.05

    out_big = jax.block_until_ready(
        physics_decoder_forward(latent2, weight2, bias2))
    ref_big = (jnp.dot(latent2, weight2.T, precision=lax.Precision.HIGHEST)
               + bias2)
    assert out_big.shape == (batch2, seq2, out_dim)
    # Default MXU matmul precision may differ slightly from the HIGHEST ref.
    assert jnp.allclose(out_big, ref_big, atol=1e-2, rtol=1e-2)

    print("KERNEL_OK")
</pallas_src>

<mosaic_0001>
module attributes {stable_mosaic.version = 11 : i64} {
  func.func @_decoder_kernel(%arg0: i32, %arg1: memref<1024x256xf32, #tpu.memory_space<vmem>>, %arg2: memref<3x256xf32, #tpu.memory_space<vmem>>, %arg3: memref<3x1xf32, #tpu.memory_space<vmem>>, %arg4: memref<3x1024xf32, #tpu.memory_space<vmem>>) attributes {dimension_semantics = [#tpu.dimension_semantics<parallel>], iteration_bounds = array<i64: 2>, scalar_prefetch = 0 : i64, scratch_operands = 0 : i64, tpu.core_type = #tpu.core_type<tc>, window_params = [{transform_indices = @transform_0, window_bounds = array<i64: 1024, 256>}, {pipeline_mode = #tpu.pipeline_mode<synchronous>, transform_indices = @transform_1, window_bounds = array<i64: 3, 256>}, {pipeline_mode = #tpu.pipeline_mode<synchronous>, transform_indices = @transform_2, window_bounds = array<i64: 3, 1>}, {transform_indices = @transform_3, window_bounds = array<i64: 3, 1024>}]} {
    %c0 = arith.constant 0 : index
    %c0_0 = arith.constant 0 : index
    %0 = vector.load %arg2[%c0, %c0_0] : memref<3x256xf32, #tpu.memory_space<vmem>>, vector<3x256xf32>
    %c0_1 = arith.constant 0 : index
    %c0_2 = arith.constant 0 : index
    %1 = vector.load %arg1[%c0_1, %c0_2] : memref<1024x256xf32, #tpu.memory_space<vmem>>, vector<1024x256xf32>
    %cst = arith.constant dense<0.000000e+00> : vector<3x1024xf32>
    %2 = tpu.matmul %0, %1, %cst {dimension_numbers = #tpu.dot_dimension_numbers<[1], [1], [0], [0], [0, 0, 1, 0], [], []>} : vector<3x256xf32>, vector<1024x256xf32>, vector<3x1024xf32> -> vector<3x1024xf32>
    %c0_3 = arith.constant 0 : index
    %c0_4 = arith.constant 0 : index
    %3 = vector.load %arg3[%c0_3, %c0_4] : memref<3x1xf32, #tpu.memory_space<vmem>>, vector<3x1xf32>
    %4 = vector.broadcast %3 : vector<3x1xf32> to vector<3x1024xf32>
    %5 = arith.addf %2, %4 : vector<3x1024xf32>
    %c0_5 = arith.constant 0 : index
    %c0_6 = arith.constant 0 : index
    %6 = vector.load %arg4[%c0_5, %c0_6] : memref<3x1024xf32, #tpu.memory_space<vmem>>, vector<3x1024xf32>
    tpu.vector_store %arg4[%c0_5, %c0_6], %5 {strides = array<i32>} : memref<3x1024xf32, #tpu.memory_space<vmem>>, vector<3x1024xf32>,
    return
  }
  func.func @transform_0(%arg0: i32) -> (i32, i32) {
    %c0_i32 = arith.constant 0 : i32
    %c0_i32_0 = arith.constant 0 : i32
    return %arg0, %c0_i32 : i32, i32
  }
  func.func @transform_1(%arg0: i32) -> (i32, i32) {
    %c0_i32 = arith.constant 0 : i32
    %c0_i32_0 = arith.constant 0 : i32
    %c0_i32_1 = arith.constant 0 : i32
    return %c0_i32, %c0_i32_0 : i32, i32
  }
  func.func @transform_2(%arg0: i32) -> (i32, i32) {
    %c0_i32 = arith.constant 0 : i32
    %c0_i32_0 = arith.constant 0 : i32
    %c0_i32_1 = arith.constant 0 : i32
    return %c0_i32, %c0_i32_0 : i32, i32
  }
  func.func @transform_3(%arg0: i32) -> (i32, i32) {
    %c0_i32 = arith.constant 0 : i32
    %c0_i32_0 = arith.constant 0 : i32
    return %c0_i32, %arg0 : i32, i32
  }
}

</mosaic_0001>

<bundles_post_ra>
// kernel: tpu_custom_call.1
= control target key start
LH: loop header
LB: loop body
LE: loop exit
PB: predicated region body
PF: predicated region fallthrough
CT: control target
= control target key end

     0   :  { %8 = vsyncpa [#allocation3], 0  ;;  %s1848_s0 = inlined_call_operand.hbm [shape: f32[2000,256], index: 0, kind: input, shape index: {}]   ;;  %s1849_s1 = inlined_call_operand.hbm [shape: f32[3,256], index: 1, kind: input, shape index: {}]   ;;  %s1850_s2 = inlined_call_operand.vmem [shape: f32[3,1], index: 2, kind: input, shape index: {}]   ;;  %s1851_s3 = inlined_call_operand.hbm [shape: f32[3,2000], index: 3, kind: output, shape index: {}]  }
   0x1   :  { %10 = vsyncpa [#allocation3 + $0x1], 0 }
   0x2   :  { %11 = vsyncpa [#allocation6], 0 }
   0x3   :  { %12 = vsyncpa [#allocation4], 0 }
   0x4   :  { %14 = vsyncpa [#allocation4 + $0x1], 0  ;;  %s1374_s12 = smov 0   ;;  %s1376_s13 = smov 0  }
   0x5   :  { %s1378_s14 = smov 0   ;;  %s1380_s15 = smov 0  }
   0x6 LB: > { %s1395_s16 = sadd.s32 4294967295, %s1346_s15   ;;  %s882_s17 = sadd.s32 4294967294, %s1346_s15   ;;  %s1346_s15 = sphi %s1380_s15, %s1872_s15   ;;  %s1342_s14 = sphi %s1378_s14, %s1871_s14   ;;  %s1338_s13 = sphi %s1376_s13, %s1870_s13   ;;  %s1334_s12 = sphi %s1374_s12, %s1869_s12  }
   0x7   : > { %s1399_s18 = sadd.s32 1, %s1346_s15   ;;  %s27_s19 = sadd.s32 1, %s1342_s14 }
   0x8   : > { %s24_s20 = ssub.s32 %s1346_s15, %s1399_s18  ;;  %p34_p0 = scmp.ne.s32.totalorder %s1342_s14, %s1338_s13 }
   0x9   : > { %p25_p1 = scmp.eq.s32.totalorder %s24_s20, 0  ;;  %p35_p2 = scmp.eq.s32.totalorder %s1346_s15, 0 }
   0xa   : > { %p40_p3 = scmp.ne.s32.totalorder %s1338_s13, %s1334_s12  ;;  %p1852_p4 = scmp.eq.s32.totalorder %s1395_s16, 0 }
   0xb   : > { %s1411_s21 = scalar_select %p25_p1, %s1342_s14, %s27_s19  }
   0xc   : > { %p1413_p5 = por %p35_p2, %p34_p0  ;;  %p1419_p6 = por %p1852_p4, %p40_p3 }
   0xd   : > { %p106_p7 = scmp.eq.s32.totalorder %s1395_s16, 1  ;;  %p112_p8 = scmp.eq.s32.totalorder %s882_s17, 1 }
   0xe   : > { %s1856_s22 = scalar_select %p1413_p5, 1, 0 }
   0xf   : > { %s1857_s23 = scalar_select %p1419_p6, 1, 0 }
  0x10   : > { %p883_p9 = scmp.ge.s32.totalorder %s1346_s15, 1  ;;  %p119_p10 = scmp.lt.s32.totalorder %s1346_s15, 3 }
  0x11   : > { %p1426_p11 = por %p106_p7, %p34_p0  ;;  %p1430_p12 = por %p112_p8, %p40_p3 }
  0x12   : > { %p1434_p13 = pnand %p883_p9, %p119_p10  ;;  %s1348_s27 = smov [#allocation5]  }
  0x13   : > { %s1858_s24 = scalar_select %p1426_p11, 1, 0 }
  0x14   : > { %s1859_s25 = scalar_select %p1430_p12, 1, 0 }
  0x15   : > { %s1860_s26 = scalar_select %p1434_p13, 1, 0 }
  0x16   : > { %p1171_p1 = pneg %p1434_p13  ;;  %s132_s28 = sshll.u32 %s1348_s27, 4  ;;  %s133_s28 = int_to_ptr.vmem [resolvable:$true] %s132_s28 }
  0x17   : > { %s1220_s5 = scalar_lea.hbm %s1849_s1, 128 }
  0x18   : > { %p1442_p2 = pnand %p1171_p1, %p1852_p4  ;;  %p1221_p0 = scmp.ne.s32.totalorder %s1849_s1, %s1220_s5 }
  0x19   : > { %p1227_p9 = scmp.lt.u32.totalorder %s1220_s5, %s1849_s1 }
  0x1a   : > { %p1222_p3 = pneg %p1442_p2 }
  0x1c   : > { %p1223_p7 = pnand %p1222_p3, %p1221_p0 }
  0x1e   : > { %p1224_p8 = pneg %p1223_p7 }
  0x20   : > { %p1229_p10 = pnand %p1227_p9, %p1224_p8 }
  0x22   : > { %1232 = shalt.err (!%p1229_p10)
}
  0x23   : > { %s1233_s10 = scalar_lea.vmem %s133_s28, 128  ;;  %p1241_p11 = scmp.lt.s32.totalorder %s133_s28, %s133_s28 }
  0x24   : > { %p1234_p1 = scmp.ne.s32.totalorder %s133_s28, %s1233_s10  ;;  %p1242_p6 = scmp.lt.s32.totalorder %s1233_s10, %s1233_s10 }
  0x26   : > { %p1236_p4 = pnand %p1234_p1, %p1222_p3  ;;  %p1243_p13 = por %p1242_p6, %p1241_p11 }
  0x28   : > { %p1237_p12 = pneg %p1236_p4 }
  0x2a   : > { %p1244_p5 = pnand %p1243_p13, %p1237_p12 }
  0x2c   : > { %1247 = shalt.err (!%p1244_p5)
}
  0x2d   : > { %1174 = dma.hbm_to_vmem [thread:$0]  (!%p1442_p2), %s1849_s1, 128, %s133_s28, [#allocation6]  }
  0x2e   : > { %p885_p0 = scmp.ge.s32.totalorder %s1346_s15, 2 }
  0x2f   : > { %p1862_p7 = scmp.ne.s32.totalorder (!%p885_p0), %s1856_s22, 0 }
  0x30   : > { %142 = sbr.rel (%p885_p0) target bundleno = 90 (0x5a), region = 24 }
  0x37   : > { %145 = sbr.rel (!%p1862_p7) target bundleno = 90 (0x5a), region = 28  ;;  %s146_s19 = sand.u32 (%p1862_p7), 1, %s1342_s14  }
  0x38   : > { %s887_s20 = sshll.u32 (%p1862_p7), %s1346_s15, 7  ;;  %s886_s27 = sshll.u32 (%p1862_p7), %s146_s19, 11 }
  0x39   : > { %s152_s30 = ssub.s32 (%p1862_p7), 250, %s887_s20  ;;  %s1472_s4 = scalar_lea.sflag (%p1862_p7), [#allocation3], %s146_s19 }
  0x3a   : > { %p153_p4 = scmp.lt.s32.totalorder (%p1862_p7), %s152_s30, 128  ;;  %s150_s5 = scalar_lea.vmem (%p1862_p7), [#allocation2], %s886_s27 }
  0x3e   : > { %s1874_s30 = smov (!%p153_p4, %s152_s30), 128 }
  0x3f   : > { %s1469_s29 = sshll.u32 %s1874_s30, 8 }
  0x40   : > { %s158_s28 = ssub.s32 32768, %s1469_s29 }
  0x41   : > { %159 = vsyncadd %s1472_s4, %s158_s28  ;;  %p890_p5 = scmp.ne.s32.totalorder %s1469_s29, 0  ;;  %s906_s22 = sshll.u32 %s1346_s15, 15 }
  0x42   : > { %s1480_s8 = scalar_lea.hbm %s1848_s0, %s906_s22  ;;  %s165_s9 = sshll.u32 %s150_s5, 4  ;;  %s1482_s9 = int_to_ptr.vmem [resolvable:$true] %s165_s9 }
  0x43   : > { %s1248_s10 = scalar_lea.hbm %s1480_s8, %s1469_s29  ;;  %s1252_s19 = scalar_lea.hbm %s1848_s0, 64000 }
  0x44   : > { %p1249_p6 = scmp.ne.s32.totalorder %s1480_s8, %s1248_s10  ;;  %p1253_p13 = scmp.lt.u32.totalorder %s1480_s8, %s1848_s0 }
  0x45   : > { %p1254_p2 = scmp.lt.u32.totalorder %s1252_s19, %s1248_s10  ;;  %p1256_p8 = scmp.lt.u32.totalorder %s1248_s10, %s1480_s8 }
  0x46   : > { %p1250_p11 = pnand %p1249_p6, %p890_p5 }
  0x47   : > { %p1255_p3 = por %p1254_p2, %p1253_p13 }
  0x48   : > { %p1251_p12 = pneg %p1250_p11 }
  0x49   : > { %p1257_p9 = por %p1256_p8, %p1255_p3 }
  0x4b   : > { %p1258_p10 = pnand %p1257_p9, %p1251_p12 }
  0x4d   : > { %1261 = shalt.err (!%p1258_p10)
}
  0x4e   : > { %s1262_s30 = scalar_lea.vmem %s1482_s9, %s1469_s29  ;;  %s1349_s28 = smov [#allocation2]  }
  0x4f   : > { %p1263_p1 = scmp.ne.s32.totalorder %s1482_s9, %s1262_s30  ;;  %s1266_s5 = sshll.u32 %s1349_s28, 4  ;;  %s1267_s5 = int_to_ptr.vmem [resolvable:$false] %s1266_s5 }
  0x50   : > { %s1268_s22 = scalar_lea.vmem %s1267_s5, 65536  ;;  %p1269_p6 = scmp.lt.s32.totalorder %s1482_s9, %s1267_s5 }
  0x51   : > { %p1264_p7 = pnand %p1263_p1, %p890_p5  ;;  %p1270_p11 = scmp.lt.s32.totalorder %s1268_s22, %s1262_s30 }
  0x53   : > { %p1265_p4 = pneg %p1264_p7  ;;  %p1271_p13 = por %p1270_p11, %p1269_p6 }
  0x55   : > { %p1272_p2 = pnand %p1271_p13, %p1265_p4 }
  0x57   : > { %1275 = shalt.err (!%p1272_p2)
}
  0x58   : > { %s1350_s6 = smov 256   ;;  %s1351_s7 = smov 16  }
  0x59   : > { %171 = dma.hbm_to_vmem [thread:$0]  (%p890_p5), %s1480_s8, %s1469_s29, %s1482_s9, %s1472_s4, %s1350_s6, %s1350_s6, %s1351_s7  }
  0x5a PF: > { %p1863_p12 = scmp.ne.s32.totalorder %s1860_s26, 0 }
  0x5b   : > { %s1512_s10 = sand.u32 (!%p1863_p12), 1, %s1338_s13   ;;  %p1864_p3 = scmp.ne.s32.totalorder (!%p1863_p12), %s1857_s23, 0 }
  0x5c   : > { %177 = sbr.rel (%p1863_p12) target bundleno = 595 (0x253), region = 32  ;;  %s896_s11 = sshll.u32 (!%p1863_p12), %s1512_s10, 11 }
  0x5d   : > { %s180_s17 = scalar_lea.sflag (!%p1863_p12), [#allocation3], %s1512_s10  ;;  %s1516_s19 = scalar_lea.vmem (!%p1863_p12), [#allocation2], %s896_s11 }
  0x63   : > { %1321 = dma.done.wait (%p1864_p3), %s180_s17, 32768  }
  0x64   : > { %1323 = vsyncadd (%p1864_p3), %s180_s17, 4294934528  ;;  %p1865_p5 = scmp.eq.s32.totalorder %s1395_s16, 0 }
  0x66   : > { %1325 = dma.done.wait (%p1865_p5), [#allocation6], 128   ;;  %p1866_p8 = pmov %p1865_p5 }
  0x67   : > { %v219_v0 = vld [vmem:[%s1516_s19 + $0x8] sm:$0xff]  ;;  %v221_v1 = vld [vmem:[%s1516_s19 + $0x18] sm:$0xff]  ;;  %v218_v5 = vld [vmem:[%s1516_s19] sm:$0xff]  ;;  %s898_s29 = sshll.u32 %s1512_s10, 5  ;;  %s907_s8 = sshll.u32 %s1395_s16, 9 }
  0x68   : > { %1327 = vsyncadd (%p1866_p8), [#allocation6], 4294967168  ;;  %v283_v2 = vld [vmem:[%s1516_s19 + $0x208] sm:$0xff]  ;;  %v908_v3 = vpack.c.bf16 %v221_v1, %v219_v0  ;;  %v285_v4 = vld [vmem:[%s1516_s19 + $0x218] sm:$0xff]  ;;  %s209_s4 = scalar_lea.vmem [#allocation7], %s898_s29  ;;  %s1804_s30 = scalar_lea.hbm %s1851_s3, %s907_s8 }
  0x69   : > { %v220_v6 = vld [vmem:[%s1516_s19 + $0x10] sm:$0xff]  ;;  %v972_v7 = vpack.c.bf16 %v285_v4, %v283_v2  ;;  %v282_v9 = vld [vmem:[%s1516_s19 + $0x200] sm:$0xff]  ;;  %v223_v11 = vld [vmem:[%s1516_s19 + $0x28] sm:$0xff]  ;;  %s802_s9 = sshll.u32 %s209_s4, 4  ;;  %s788_s28 = scalar_lea.sflag [#allocation4], %s1512_s10  ;;  %s1806_s9 = int_to_ptr.vmem [resolvable:$true] %s802_s9 }
  0x6a   : > { %v910_v8 = vpack.c.bf16 %v220_v6, %v218_v5  ;;  %v284_v10 = vld [vmem:[%s1516_s19 + $0x210] sm:$0xff]  ;;  %909 = vmatprep.subr.bf16.mxu0 %v908_v3  ;;  %v225_v13 = vld [vmem:[%s1516_s19 + $0x38] sm:$0xff]  ;;  %v287_v14 = vld [vmem:[%s1516_s19 + $0x228] sm:$0xff]  ;;  %s1276_s5 = scalar_lea.vmem %s1806_s9, 512  ;;  %p1867_p10 = scmp.ne.s32.totalorder %s1858_s24, 0 }
  0x6b   : > { %v974_v12 = vpack.c.bf16 %v284_v10, %v282_v9  ;;  %v289_v15 = vld [vmem:[%s1516_s19 + $0x238] sm:$0xff]  ;;  %973 = vmatprep.subr.bf16.mxu1 %v972_v7  ;;  %v912_v16 = vpack.c.bf16 %v225_v13, %v223_v11  ;;  %v222_v18 = vld [vmem:[%s1516_s19 + $0x20] sm:$0xff]  ;;  %v224_v19 = vld [vmem:[%s1516_s19 + $0x30] sm:$0xff]  ;;  %p1277_p9 = scmp.ne.s32.totalorder %s1806_s9, %s1276_s5  ;;  %s1353_s16 = smov [#allocation7]  }
  0x6c   : > { %911 = vmatpush1.bf16.xpose.msra.mxu0 %v910_v8  ;;  %v976_v17 = vpack.c.bf16 %v289_v15, %v287_v14  ;;  %v286_v20 = vld [vmem:[%s1516_s19 + $0x220] sm:$0xff]  ;;  %v288_v21 = vld [vmem:[%s1516_s19 + $0x230] sm:$0xff]  ;;  %v227_v22 = vld [vmem:[%s1516_s19 + $0x48] sm:$0xff]  ;;  %v914_v26 = vpack.c.bf16 %v224_v19, %v222_v18  ;;  %s1280_s22 = sshll.u32 %s1353_s16, 4  ;;  %s1281_s22 = int_to_ptr.vmem [resolvable:$false] %s1280_s22 }
  0x6d   : > { %975 = vmatpush1.bf16.xpose.msra.mxu1 %v974_v12  ;;  %913 = vmatprep.subr.bf16.mxu0 %v912_v16  ;;  %v229_v23 = vld [vmem:[%s1516_s19 + $0x58] sm:$0xff]  ;;  %v291_v24 = vld [vmem:[%s1516_s19 + $0x248] sm:$0xff]  ;;  %v978_v27 = vpack.c.bf16 %v288_v21, %v286_v20  ;;  %v226_v30 = vld [vmem:[%s1516_s19 + $0x40] sm:$0xff]  ;;  %p1278_p1 = pnand %p1277_p9, %p1867_p10  ;;  %s1282_s6 = scalar_lea.vmem %s1281_s22, 1024 }
  0x6e   : > { %977 = vmatprep.subr.bf16.mxu1 %v976_v17  ;;  %v293_v25 = vld [vmem:[%s1516_s19 + $0x258] sm:$0xff]  ;;  %v916_v28 = vpack.c.bf16 %v229_v23, %v227_v22  ;;  %v228_v31 = vld [vmem:[%s1516_s19 + $0x50] sm:$0xff]  ;;  %v290_v32 = vld [vmem:[%s1516_s19 + $0x240] sm:$0xff]  ;;  %p1283_p4 = scmp.lt.s32.totalorder %s1806_s9, %s1281_s22  ;;  %p1284_p6 = scmp.lt.s32.totalorder %s1282_s6, %s1276_s5 }
  0x6f   : > { %v980_v29 = vpack.c.bf16 %v293_v25, %v291_v24  ;;  %v292_v33 = vld [vmem:[%s1516_s19 + $0x250] sm:$0xff]  ;;  %v231_v34 = vld [vmem:[%s1516_s19 + $0x68] sm:$0xff]  ;;  %v233_v35 = vld [vmem:[%s1516_s19 + $0x78] sm:$0xff]  ;;  %v918_v38 = vpack.c.bf16 %v228_v31, %v226_v30  ;;  %p1279_p7 = pneg %p1278_p1 }
  0x70   : > { %v295_v36 = vld [vmem:[%s1516_s19 + $0x268] sm:$0xff]  ;;  %v297_v37 = vld [vmem:[%s1516_s19 + $0x278] sm:$0xff]  ;;  %v982_v39 = vpack.c.bf16 %v292_v33, %v290_v32  ;;  %v920_v40 = vpack.c.bf16 %v233_v35, %v231_v34  ;;  %v230_v42 = vld [vmem:[%s1516_s19 + $0x60] sm:$0xff]  ;;  %p1285_p11 = por %p1284_p6, %p1283_p4 }
  0x71   : > { %v984_v41 = vpack.c.bf16 %v297_v37, %v295_v36  ;;  %v232_v43 = vld [vmem:[%s1516_s19 + $0x70] sm:$0xff]  ;;  %v294_v44 = vld [vmem:[%s1516_s19 + $0x260] sm:$0xff]  ;;  %v235_v46 = vld [vmem:[%s1516_s19 + $0x88] sm:$0xff] }
  0x72   : > { %v296_v45 = vld [vmem:[%s1516_s19 + $0x270] sm:$0xff]  ;;  %v237_v47 = vld [vmem:[%s1516_s19 + $0x98] sm:$0xff]  ;;  %v299_v48 = vld [vmem:[%s1516_s19 + $0x288] sm:$0xff]  ;;  %v922_v50 = vpack.c.bf16 %v232_v43, %v230_v42  ;;  %p1286_p13 = pnand %p1285_p11, %p1279_p7 }
  0x73   : > { %v301_v49 = vld [vmem:[%s1516_s19 + $0x298] sm:$0xff]  ;;  %v986_v51 = vpack.c.bf16 %v296_v45, %v294_v44  ;;  %v924_v52 = vpack.c.bf16 %v237_v47, %v235_v46  ;;  %v234_v54 = vld [vmem:[%s1516_s19 + $0x80] sm:$0xff]  ;;  %v236_v55 = vld [vmem:[%s1516_s19 + $0x90] sm:$0xff] }
  0x74   : > { %915 = vmatpush1.bf16.xpose.msra.mxu0 %v914_v26  ;;  %v988_v53 = vpack.c.bf16 %v301_v49, %v299_v48  ;;  %v298_v56 = vld [vmem:[%s1516_s19 + $0x280] sm:$0xff]  ;;  %v300_v57 = vld [vmem:[%s1516_s19 + $0x290] sm:$0xff]  ;;  %v239_v58 = vld [vmem:[%s1516_s19 + $0xa8] sm:$0xff]  ;;  %v926_v62 = vpack.c.bf16 %v236_v55, %v234_v54 }
  0x75   : > { %979 = vmatpush1.bf16.xpose.msra.mxu1 %v978_v27  ;;  %917 = vmatprep.subr.bf16.mxu0 %v916_v28  ;;  %v241_v59 = vld [vmem:[%s1516_s19 + $0xb8] sm:$0xff]  ;;  %v303_v60 = vld [vmem:[%s1516_s19 + $0x2a8] sm:$0xff]  ;;  %v990_v63 = vpack.c.bf16 %v300_v57, %v298_v56  ;;  %v238_v2 = vld [vmem:[%s1516_s19 + $0xa0] sm:$0xff] }
  0x76   : > { %981 = vmatprep.subr.bf16.mxu1 %v980_v29  ;;  %v305_v61 = vld [vmem:[%s1516_s19 + $0x2b8] sm:$0xff]  ;;  %v928_v0 = vpack.c.bf16 %v241_v59, %v239_v58  ;;  %v240_v3 = vld [vmem:[%s1516_s19 + $0xb0] sm:$0xff]  ;;  %v302_v4 = vld [vmem:[%s1516_s19 + $0x2a0] sm:$0xff] }
  0x77   : > { %v992_v1 = vpack.c.bf16 %v305_v61, %v303_v60  ;;  %v304_v5 = vld [vmem:[%s1516_s19 + $0x2b0] sm:$0xff]  ;;  %v243_v6 = vld [vmem:[%s1516_s19 + $0xc8] sm:$0xff]  ;;  %v245_v7 = vld [vmem:[%s1516_s19 + $0xd8] sm:$0xff]  ;;  %v930_v10 = vpack.c.bf16 %v240_v3, %v238_v2 }
  0x78   : > { %v307_v8 = vld [vmem:[%s1516_s19 + $0x2c8] sm:$0xff]  ;;  %v309_v9 = vld [vmem:[%s1516_s19 + $0x2d8] sm:$0xff]  ;;  %v994_v11 = vpack.c.bf16 %v304_v5, %v302_v4  ;;  %v932_v12 = vpack.c.bf16 %v245_v7, %v243_v6  ;;  %v1578_v14 = vld [vmem:[#allocation5] sm:$0x77] }
  0x79   : > { %v996_v13 = vpack.c.bf16 %v309_v9, %v307_v8  ;;  %v1582_v15 = vcombine.high %v1578_v14, %v1578_v14  ;;  %v242_v16 = vld [vmem:[%s1516_s19 + $0xc0] sm:$0xff]  ;;  %v244_v17 = vld [vmem:[%s1516_s19 + $0xd0] sm:$0xff]  ;;  %v247_v20 = vld [vmem:[%s1516_s19 + $0xe8] sm:$0xff] }
  0x7a   : > { %v306_v18 = vld [vmem:[%s1516_s19 + $0x2c0] sm:$0xff]  ;;  %v308_v19 = vld [vmem:[%s1516_s19 + $0x2d0] sm:$0xff]  ;;  %v249_v21 = vld [vmem:[%s1516_s19 + $0xf8] sm:$0xff]  ;;  %v934_v24 = vpack.c.bf16 %v244_v17, %v242_v16 }
  0x7b   : > { %547 = vmatprep.mubr.f32.mxu0 %v1582_v15  ;;  %v311_v22 = vld [vmem:[%s1516_s19 + $0x2e8] sm:$0xff]  ;;  %v313_v23 = vld [vmem:[%s1516_s19 + $0x2f8] sm:$0xff]  ;;  %618 = vmatprep.mubr.f32.mxu1 %v1582_v15  ;;  %v998_v25 = vpack.c.bf16 %v308_v19, %v306_v18  ;;  %v936_v26 = vpack.c.bf16 %v249_v21, %v247_v20  ;;  %v246_v28 = vld [vmem:[%s1516_s19 + $0xe0] sm:$0xff]  ;;  %v1352_v21 = vmov 0  }
  0x7c   : > { %919 = vmatpush1.bf16.xpose.msra.mxu0 %v918_v38  ;;  %v1000_v27 = vpack.c.bf16 %v313_v23, %v311_v22  ;;  %v248_v29 = vld [vmem:[%s1516_s19 + $0xf0] sm:$0xff]  ;;  %v310_v30 = vld [vmem:[%s1516_s19 + $0x2e0] sm:$0xff]  ;;  %v251_v32 = vld [vmem:[%s1516_s19 + $0x108] sm:$0xff]  ;;  %1218 = vset.pattern.permute.xlu0 %v1352_v21 }
  0x7d   : > { %983 = vmatpush1.bf16.xpose.msra.mxu1 %v982_v39  ;;  %921 = vmatprep.subr.bf16.mxu0 %v920_v40  ;;  %v312_v31 = vld [vmem:[%s1516_s19 + $0x2f0] sm:$0xff]  ;;  %v253_v33 = vld [vmem:[%s1516_s19 + $0x118] sm:$0xff]  ;;  %v315_v34 = vld [vmem:[%s1516_s19 + $0x308] sm:$0xff]  ;;  %v938_v36 = vpack.c.bf16 %v248_v29, %v246_v28 }
  0x7e   : > { %985 = vmatprep.subr.bf16.mxu1 %v984_v41  ;;  %v317_v35 = vld [vmem:[%s1516_s19 + $0x318] sm:$0xff]  ;;  %v1002_v37 = vpack.c.bf16 %v312_v31, %v310_v30  ;;  %v940_v38 = vpack.c.bf16 %v253_v33, %v251_v32  ;;  %v250_v40 = vld [vmem:[%s1516_s19 + $0x100] sm:$0xff]  ;;  %v252_v41 = vld [vmem:[%s1516_s19 + $0x110] sm:$0xff] }
  0x7f   : > { %v1004_v39 = vpack.c.bf16 %v317_v35, %v315_v34  ;;  %v314_v42 = vld [vmem:[%s1516_s19 + $0x300] sm:$0xff]  ;;  %v316_v43 = vld [vmem:[%s1516_s19 + $0x310] sm:$0xff]  ;;  %v255_v44 = vld [vmem:[%s1516_s19 + $0x128] sm:$0xff]  ;;  %v942_v48 = vpack.c.bf16 %v252_v41, %v250_v40 }
  0x80   : > { %v257_v45 = vld [vmem:[%s1516_s19 + $0x138] sm:$0xff]  ;;  %v319_v46 = vld [vmem:[%s1516_s19 + $0x328] sm:$0xff]  ;;  %v1006_v49 = vpack.c.bf16 %v316_v43, %v314_v42  ;;  %v318_v54 = vld [vmem:[%s1516_s19 + $0x320] sm:$0xff] }
  0x81   : > { %v321_v47 = vld [vmem:[%s1516_s19 + $0x338] sm:$0xff]  ;;  %v320_v55 = vld [vmem:[%s1516_s19 + $0x330] sm:$0xff]  ;;  %v259_v56 = vld [vmem:[%s1516_s19 + $0x148] sm:$0xff] }
  0x82   : > { %v261_v57 = vld [vmem:[%s1516_s19 + $0x158] sm:$0xff]  ;;  %v323_v58 = vld [vmem:[%s1516_s19 + $0x348] sm:$0xff]  ;;  %v1010_v61 = vpack.c.bf16 %v320_v55, %v318_v54  ;;  %v322_v2 = vld [vmem:[%s1516_s19 + $0x340] sm:$0xff] }
  0x83   : > { %v325_v59 = vld [vmem:[%s1516_s19 + $0x358] sm:$0xff]  ;;  %v324_v3 = vld [vmem:[%s1516_s19 + $0x350] sm:$0xff]  ;;  %v263_v4 = vld [vmem:[%s1516_s19 + $0x168] sm:$0xff] }
  0x84   : > { %923 = vmatpush1.bf16.xpose.msra.mxu0 %v922_v50  ;;  %v944_v50 = vpack.c.bf16 %v257_v45, %v255_v44  ;;  %v265_v5 = vld [vmem:[%s1516_s19 + $0x178] sm:$0xff]  ;;  %v327_v6 = vld [vmem:[%s1516_s19 + $0x368] sm:$0xff]  ;;  %v1014_v9 = vpack.c.bf16 %v324_v3, %v322_v2  ;;  %v326_v16 = vld [vmem:[%s1516_s19 + $0x360] sm:$0xff] }
  0x85   : > { %987 = vmatpush1.bf16.xpose.msra.mxu1 %v986_v51  ;;  %925 = vmatprep.subr.bf16.mxu0 %v924_v52  ;;  %v1008_v51 = vpack.c.bf16 %v321_v47, %v319_v46  ;;  %v254_v52 = vld [vmem:[%s1516_s19 + $0x120] sm:$0xff]  ;;  %v329_v7 = vld [vmem:[%s1516_s19 + $0x378] sm:$0xff]  ;;  %v328_v18 = vld [vmem:[%s1516_s19 + $0x370] sm:$0xff] }
  0x86   : > { %989 = vmatprep.subr.bf16.mxu1 %v988_v53  ;;  %v256_v53 = vld [vmem:[%s1516_s19 + $0x130] sm:$0xff]  ;;  %v474_v17 = vld [vmem:[%s1850_s2] sm:$0x7]  ;;  %v267_v19 = vld [vmem:[%s1516_s19 + $0x188] sm:$0xff] }
  0x87   : > { %v946_v60 = vpack.c.bf16 %v256_v53, %v254_v52  ;;  %v269_v20 = vld [vmem:[%s1516_s19 + $0x198] sm:$0xff]  ;;  %v331_v22 = vld [vmem:[%s1516_s19 + $0x388] sm:$0xff]  ;;  %477 = vperm.xlu0 %1218, %v474_v17   ;;  %v266_v28 = vld [vmem:[%s1516_s19 + $0x180] sm:$0xff] }
  0x88   : > { %v333_v23 = vld [vmem:[%s1516_s19 + $0x398] sm:$0xff]  ;;  %v268_v29 = vld [vmem:[%s1516_s19 + $0x190] sm:$0xff]  ;;  %v330_v30 = vld [vmem:[%s1516_s19 + $0x380] sm:$0xff] }
  0x89   : > { %v332_v31 = vld [vmem:[%s1516_s19 + $0x390] sm:$0xff]  ;;  %v271_v32 = vld [vmem:[%s1516_s19 + $0x1a8] sm:$0xff]  ;;  %v273_v33 = vld [vmem:[%s1516_s19 + $0x1b8] sm:$0xff] }
  0x8a   : > { %v335_v34 = vld [vmem:[%s1516_s19 + $0x3a8] sm:$0xff]  ;;  %v337_v35 = vld [vmem:[%s1516_s19 + $0x3b8] sm:$0xff]  ;;  %v270_v40 = vld [vmem:[%s1516_s19 + $0x1a0] sm:$0xff] }
  0x8b   : > { %v272_v41 = vld [vmem:[%s1516_s19 + $0x1b0] sm:$0xff]  ;;  %v334_v42 = vld [vmem:[%s1516_s19 + $0x3a0] sm:$0xff]  ;;  %v275_v44 = vld [vmem:[%s1516_s19 + $0x1c8] sm:$0xff] }
  0x8c   : > { %927 = vmatpush1.bf16.xpose.msra.mxu0 %v926_v62  ;;  %v948_v62 = vpack.c.bf16 %v261_v57, %v259_v56  ;;  %v336_v43 = vld [vmem:[%s1516_s19 + $0x3b0] sm:$0xff]  ;;  %v277_v45 = vld [vmem:[%s1516_s19 + $0x1d8] sm:$0xff]  ;;  %v339_v46 = vld [vmem:[%s1516_s19 + $0x3c8] sm:$0xff] }
  0x8d   : > { %991 = vmatpush1.bf16.xpose.msra.mxu1 %v990_v63  ;;  %929 = vmatprep.subr.bf16.mxu0 %v928_v0  ;;  %v1012_v63 = vpack.c.bf16 %v325_v59, %v323_v58  ;;  %v258_v0 = vld [vmem:[%s1516_s19 + $0x140] sm:$0xff]  ;;  %v341_v47 = vld [vmem:[%s1516_s19 + $0x3d8] sm:$0xff]  ;;  %v276_v53 = vld [vmem:[%s1516_s19 + $0x1d0] sm:$0xff] }
  0x8e   : > { %993 = vmatprep.subr.bf16.mxu1 %v992_v1  ;;  %v260_v1 = vld [vmem:[%s1516_s19 + $0x150] sm:$0xff]  ;;  %v274_v52 = vld [vmem:[%s1516_s19 + $0x1c0] sm:$0xff]  ;;  %v279_v56 = vld [vmem:[%s1516_s19 + $0x1e8] sm:$0xff] }
  0x8f   : > { %v950_v8 = vpack.c.bf16 %v260_v1, %v258_v0  ;;  %v338_v54 = vld [vmem:[%s1516_s19 + $0x3c0] sm:$0xff]  ;;  %v340_v55 = vld [vmem:[%s1516_s19 + $0x3d0] sm:$0xff]  ;;  %v281_v57 = vld [vmem:[%s1516_s19 + $0x1f8] sm:$0xff] }
  0x90   : > { %v343_v58 = vld [vmem:[%s1516_s19 + $0x3e8] sm:$0xff]  ;;  %v345_v59 = vld [vmem:[%s1516_s19 + $0x3f8] sm:$0xff]  ;;  %v278_v0 = vld [vmem:[%s1516_s19 + $0x1e0] sm:$0xff] }
  0x91   : > { %v280_v1 = vld [vmem:[%s1516_s19 + $0x1f0] sm:$0xff]  ;;  %v342_v2 = vld [vmem:[%s1516_s19 + $0x3e0] sm:$0xff]  ;;  %v417_v21 = vld [vmem:[%s1516_s19 + $0x638] sm:$0xff] }
  0x92   : > { %v344_v3 = vld [vmem:[%s1516_s19 + $0x3f0] sm:$0xff] }
  0x93   : > { %v412_v17 = vld [vmem:[%s1516_s19 + $0x610] sm:$0xff] }
  0x94   : > { %931 = vmatpush1.bf16.xpose.msra.mxu0 %v930_v10  ;;  %v952_v10 = vpack.c.bf16 %v265_v5, %v263_v4  ;;  %v347_v4 = vld [vmem:[%s1516_s19 + $0x408] sm:$0xff]  ;;  %v349_v5 = vld [vmem:[%s1516_s19 + $0x418] sm:$0xff] }
  0x95   : > { %995 = vmatpush1.bf16.xpose.msra.mxu1 %v994_v11  ;;  %933 = vmatprep.subr.bf16.mxu0 %v932_v12  ;;  %v1016_v11 = vpack.c.bf16 %v329_v7, %v327_v6  ;;  %v262_v12 = vld [vmem:[%s1516_s19 + $0x160] sm:$0xff]  ;;  %v411_v6 = vld [vmem:[%s1516_s19 + $0x608] sm:$0xff]  ;;  %v413_v7 = vld [vmem:[%s1516_s19 + $0x618] sm:$0xff] }
  0x96   : > { %997 = vmatprep.subr.bf16.mxu1 %v996_v13  ;;  %v264_v13 = vld [vmem:[%s1516_s19 + $0x170] sm:$0xff] }
  0x9c   : > { %935 = vmatpush1.bf16.xpose.msra.mxu0 %v934_v24  ;;  %v954_v24 = vpack.c.bf16 %v264_v13, %v262_v12  ;;  %v346_v12 = vld [vmem:[%s1516_s19 + $0x400] sm:$0xff]  ;;  %v348_v13 = vld [vmem:[%s1516_s19 + $0x410] sm:$0xff] }
  0x9d   : > { %999 = vmatpush1.bf16.xpose.msra.mxu1 %v998_v25  ;;  %937 = vmatprep.subr.bf16.mxu0 %v936_v26  ;;  %v1018_v25 = vpack.c.bf16 %v328_v18, %v326_v16  ;;  %v956_v26 = vpack.c.bf16 %v269_v20, %v267_v19  ;;  %v410_v16 = vld [vmem:[%s1516_s19 + $0x600] sm:$0xff]  ;;  %v351_v18 = vld [vmem:[%s1516_s19 + $0x428] sm:$0xff]  ;;  %v353_v19 = vld [vmem:[%s1516_s19 + $0x438] sm:$0xff] }
  0x9e   : > { %1001 = vmatprep.subr.bf16.mxu1 %v1000_v27  ;;  %v1020_v27 = vpack.c.bf16 %v333_v23, %v331_v22  ;;  %v415_v20 = vld [vmem:[%s1516_s19 + $0x628] sm:$0xff]  ;;  %v1038_v22 = vpack.c.bf16 %v348_v13, %v346_v12  ;;  %v1102_v23 = vpack.c.bf16 %v412_v17, %v410_v16  ;;  %v432_v12 = vld [vmem:[%s1516_s19 + $0x6b0] sm:$0xff]  ;;  %v373_v16 = vld [vmem:[%s1516_s19 + $0x4d8] sm:$0xff] }
  0x9f   : > { %v371_v13 = vld [vmem:[%s1516_s19 + $0x4c8] sm:$0xff] }
  0xa0   : > { %v435_v17 = vld [vmem:[%s1516_s19 + $0x6c8] sm:$0xff] }
  0xa4   : > { %939 = vmatpush1.bf16.xpose.msra.mxu0 %v938_v36  ;;  %v958_v36 = vpack.c.bf16 %v268_v29, %v266_v28  ;;  %v414_v28 = vld [vmem:[%s1516_s19 + $0x620] sm:$0xff]  ;;  %v416_v29 = vld [vmem:[%s1516_s19 + $0x630] sm:$0xff] }
  0xa5   : > { %1003 = vmatpush1.bf16.xpose.msra.mxu1 %v1002_v37  ;;  %941 = vmatprep.subr.bf16.mxu0 %v940_v38  ;;  %v1022_v37 = vpack.c.bf16 %v332_v31, %v330_v30  ;;  %v960_v38 = vpack.c.bf16 %v273_v33, %v271_v32  ;;  %v355_v30 = vld [vmem:[%s1516_s19 + $0x448] sm:$0xff]  ;;  %v357_v31 = vld [vmem:[%s1516_s19 + $0x458] sm:$0xff] }
  0xa6   : > { %1005 = vmatprep.subr.bf16.mxu1 %v1004_v39  ;;  %v1024_v39 = vpack.c.bf16 %v337_v35, %v335_v34  ;;  %v419_v32 = vld [vmem:[%s1516_s19 + $0x648] sm:$0xff]  ;;  %v421_v33 = vld [vmem:[%s1516_s19 + $0x658] sm:$0xff]  ;;  %v1106_v35 = vpack.c.bf16 %v416_v29, %v414_v28 }
  0xa7   : > { %v377_v28 = vld [vmem:[%s1516_s19 + $0x4f8] sm:$0xff]  ;;  %v439_v29 = vld [vmem:[%s1516_s19 + $0x6e8] sm:$0xff] }
  0xac   : > { %943 = vmatpush1.bf16.xpose.msra.mxu0 %v942_v48  ;;  %v962_v48 = vpack.c.bf16 %v272_v41, %v270_v40  ;;  %v418_v40 = vld [vmem:[%s1516_s19 + $0x640] sm:$0xff]  ;;  %v420_v41 = vld [vmem:[%s1516_s19 + $0x650] sm:$0xff] }
  0xad   : > { %1007 = vmatpush1.bf16.xpose.msra.mxu1 %v1006_v49  ;;  %945 = vmatprep.subr.bf16.mxu0 %v944_v50  ;;  %v1026_v49 = vpack.c.bf16 %v336_v43, %v334_v42  ;;  %v964_v50 = vpack.c.bf16 %v277_v45, %v275_v44  ;;  %v359_v42 = vld [vmem:[%s1516_s19 + $0x468] sm:$0xff]  ;;  %v425_v44 = vld [vmem:[%s1516_s19 + $0x678] sm:$0xff] }
  0xae   : > { %1009 = vmatprep.subr.bf16.mxu1 %v1008_v51  ;;  %v1028_v51 = vpack.c.bf16 %v341_v47, %v339_v46  ;;  %v423_v43 = vld [vmem:[%s1516_s19 + $0x668] sm:$0xff]  ;;  %v1110_v46 = vpack.c.bf16 %v420_v41, %v418_v40  ;;  %v381_v40 = vld [vmem:[%s1516_s19 + $0x518] sm:$0xff] }
  0xaf   : > { %v443_v41 = vld [vmem:[%s1516_s19 + $0x708] sm:$0xff] }
  0xb4   : > { %947 = vmatpush1.bf16.xpose.msra.mxu0 %v946_v60  ;;  %v966_v60 = vpack.c.bf16 %v276_v53, %v274_v52  ;;  %v424_v52 = vld [vmem:[%s1516_s19 + $0x670] sm:$0xff]  ;;  %v363_v53 = vld [vmem:[%s1516_s19 + $0x488] sm:$0xff] }
  0xb5   : > { %1011 = vmatpush1.bf16.xpose.msra.mxu1 %v1010_v61  ;;  %949 = vmatprep.subr.bf16.mxu0 %v948_v62  ;;  %v1030_v61 = vpack.c.bf16 %v340_v55, %v338_v54  ;;  %v968_v62 = vpack.c.bf16 %v281_v57, %v279_v56  ;;  %v365_v54 = vld [vmem:[%s1516_s19 + $0x498] sm:$0xff]  ;;  %v427_v55 = vld [vmem:[%s1516_s19 + $0x688] sm:$0xff] }
  0xb6   : > { %1013 = vmatprep.subr.bf16.mxu1 %v1012_v63  ;;  %v1032_v63 = vpack.c.bf16 %v345_v59, %v343_v58  ;;  %v429_v56 = vld [vmem:[%s1516_s19 + $0x698] sm:$0xff]  ;;  %v1052_v59 = vpack.c.bf16 %v365_v54, %v363_v53 }
  0xb7   : > { %v449_v53 = vld [vmem:[%s1516_s19 + $0x738] sm:$0xff] }
  0xbc   : > { %951 = vmatpush1.bf16.xpose.msra.mxu0 %v950_v8  ;;  %v970_v8 = vpack.c.bf16 %v280_v1, %v278_v0  ;;  %v428_v0 = vld [vmem:[%s1516_s19 + $0x690] sm:$0xff]  ;;  %v367_v1 = vld [vmem:[%s1516_s19 + $0x4a8] sm:$0xff] }
  0xbd   : > { %1015 = vmatpush1.bf16.xpose.msra.mxu1 %v1014_v9  ;;  %953 = vmatprep.subr.bf16.mxu0 %v952_v10  ;;  %v1034_v9 = vpack.c.bf16 %v344_v3, %v342_v2  ;;  %v1036_v10 = vpack.c.bf16 %v349_v5, %v347_v4  ;;  %v369_v2 = vld [vmem:[%s1516_s19 + $0x4b8] sm:$0xff]  ;;  %v431_v3 = vld [vmem:[%s1516_s19 + $0x6a8] sm:$0xff] }
  0xbe   : > { %1017 = vmatprep.subr.bf16.mxu1 %v1016_v11  ;;  %v1100_v11 = vpack.c.bf16 %v413_v7, %v411_v6  ;;  %v433_v4 = vld [vmem:[%s1516_s19 + $0x6b8] sm:$0xff]  ;;  %v1056_v7 = vpack.c.bf16 %v369_v2, %v367_v1 }
  0xbf   : > { %v453_v1 = vld [vmem:[%s1516_s19 + $0x758] sm:$0xff] }
  0xc4   : > { %955 = vmatpush1.bf16.xpose.msra.mxu0 %v954_v24  ;;  %v1040_v24 = vpack.c.bf16 %v353_v19, %v351_v18  ;;  %v437_v18 = vld [vmem:[%s1516_s19 + $0x6d8] sm:$0xff] }
  0xc5   : > { %1019 = vmatpush1.bf16.xpose.msra.mxu1 %v1018_v25  ;;  %957 = vmatprep.subr.bf16.mxu0 %v956_v26  ;;  %v1104_v25 = vpack.c.bf16 %v417_v21, %v415_v20  ;;  %v350_v26 = vld [vmem:[%s1516_s19 + $0x420] sm:$0xff]  ;;  %v1060_v21 = vpack.c.bf16 %v373_v16, %v371_v13  ;;  %v457_v13 = vld [vmem:[%s1516_s19 + $0x778] sm:$0xff] }
  0xc6   : > { %1021 = vmatprep.subr.bf16.mxu1 %v1020_v27  ;;  %v352_v27 = vld [vmem:[%s1516_s19 + $0x430] sm:$0xff] }
  0xc7   : > { %v1042_v34 = vpack.c.bf16 %v352_v27, %v350_v26  ;;  %v436_v26 = vld [vmem:[%s1516_s19 + $0x6d0] sm:$0xff]  ;;  %v375_v27 = vld [vmem:[%s1516_s19 + $0x4e8] sm:$0xff] }
  0xcc   : > { %959 = vmatpush1.bf16.xpose.msra.mxu0 %v958_v36  ;;  %v1044_v36 = vpack.c.bf16 %v357_v31, %v355_v30  ;;  %v441_v30 = vld [vmem:[%s1516_s19 + $0x6f8] sm:$0xff] }
  0xcd   : > { %1023 = vmatpush1.bf16.xpose.msra.mxu1 %v1022_v37  ;;  %961 = vmatprep.subr.bf16.mxu0 %v960_v38  ;;  %v1108_v37 = vpack.c.bf16 %v421_v33, %v419_v32  ;;  %v354_v38 = vld [vmem:[%s1516_s19 + $0x440] sm:$0xff]  ;;  %v1064_v33 = vpack.c.bf16 %v377_v28, %v375_v27  ;;  %v461_v27 = vld [vmem:[%s1516_s19 + $0x798] sm:$0xff] }
  0xce   : > { %1025 = vmatprep.subr.bf16.mxu1 %v1024_v39  ;;  %v356_v39 = vld [vmem:[%s1516_s19 + $0x450] sm:$0xff] }
  0xcf   : > { %v1046_v45 = vpack.c.bf16 %v356_v39, %v354_v38  ;;  %v440_v38 = vld [vmem:[%s1516_s19 + $0x6f0] sm:$0xff]  ;;  %v379_v39 = vld [vmem:[%s1516_s19 + $0x508] sm:$0xff] }
  0xd4   : > { %963 = vmatpush1.bf16.xpose.msra.mxu0 %v962_v48  ;;  %v1112_v48 = vpack.c.bf16 %v425_v44, %v423_v43  ;;  %v1068_v44 = vpack.c.bf16 %v381_v40, %v379_v39  ;;  %v465_v39 = vld [vmem:[%s1516_s19 + $0x7b8] sm:$0xff] }
  0xd5   : > { %1027 = vmatpush1.bf16.xpose.msra.mxu1 %v1026_v49  ;;  %965 = vmatprep.subr.bf16.mxu0 %v964_v50  ;;  %v358_v49 = vld [vmem:[%s1516_s19 + $0x460] sm:$0xff]  ;;  %v360_v50 = vld [vmem:[%s1516_s19 + $0x470] sm:$0xff] }
  0xd6   : > { %1029 = vmatprep.subr.bf16.mxu1 %v1028_v51  ;;  %v422_v51 = vld [vmem:[%s1516_s19 + $0x660] sm:$0xff]  ;;  %v1050_v57 = vpack.c.bf16 %v360_v50, %v358_v49  ;;  %v444_v49 = vld [vmem:[%s1516_s19 + $0x710] sm:$0xff]  ;;  %v383_v50 = vld [vmem:[%s1516_s19 + $0x528] sm:$0xff] }
  0xd7   : > { %v1114_v58 = vpack.c.bf16 %v424_v52, %v422_v51  ;;  %v385_v51 = vld [vmem:[%s1516_s19 + $0x538] sm:$0xff]  ;;  %v447_v52 = vld [vmem:[%s1516_s19 + $0x728] sm:$0xff] }
  0xdc   : > { %967 = vmatpush1.bf16.xpose.msra.mxu0 %v966_v60  ;;  %v1116_v60 = vpack.c.bf16 %v429_v56, %v427_v55  ;;  %v1072_v56 = vpack.c.bf16 %v385_v51, %v383_v50  ;;  %v469_v50 = vld [vmem:[%s1516_s19 + $0x7d8] sm:$0xff] }
  0xdd   : > { %1031 = vmatpush1.bf16.xpose.msra.mxu1 %v1030_v61  ;;  %969 = vmatprep.subr.bf16.mxu0 %v968_v62  ;;  %v362_v61 = vld [vmem:[%s1516_s19 + $0x480] sm:$0xff]  ;;  %v364_v62 = vld [vmem:[%s1516_s19 + $0x490] sm:$0xff] }
  0xde   : > { %1033 = vmatprep.subr.bf16.mxu1 %v1032_v63  ;;  %v426_v63 = vld [vmem:[%s1516_s19 + $0x680] sm:$0xff]  ;;  %v1054_v5 = vpack.c.bf16 %v364_v62, %v362_v61  ;;  %v448_v61 = vld [vmem:[%s1516_s19 + $0x730] sm:$0xff]  ;;  %v387_v62 = vld [vmem:[%s1516_s19 + $0x548] sm:$0xff] }
  0xdf   : > { %v1118_v6 = vpack.c.bf16 %v428_v0, %v426_v63  ;;  %v389_v63 = vld [vmem:[%s1516_s19 + $0x558] sm:$0xff]  ;;  %v451_v0 = vld [vmem:[%s1516_s19 + $0x748] sm:$0xff] }
  0xe4   : > { %971 = vmatpush1.bf16.xpose.msra.mxu0 %v970_v8  ;;  %v1120_v8 = vpack.c.bf16 %v433_v4, %v431_v3  ;;  %v1076_v4 = vpack.c.bf16 %v389_v63, %v387_v62  ;;  %v473_v62 = vld [vmem:[%s1516_s19 + $0x7f8] sm:$0xff] }
  0xe5   : > { %1035 = vmatpush1.bf16.xpose.msra.mxu1 %v1034_v9  ;;  %1037 = vmatprep.subr.bf16.mxu0 %v1036_v10  ;;  %v366_v9 = vld [vmem:[%s1516_s19 + $0x4a0] sm:$0xff]  ;;  %v368_v10 = vld [vmem:[%s1516_s19 + $0x4b0] sm:$0xff] }
  0xe6   : > { %1101 = vmatprep.subr.bf16.mxu1 %v1100_v11  ;;  %v430_v11 = vld [vmem:[%s1516_s19 + $0x6a0] sm:$0xff]  ;;  %v1058_v19 = vpack.c.bf16 %v368_v10, %v366_v9  ;;  %v452_v9 = vld [vmem:[%s1516_s19 + $0x750] sm:$0xff]  ;;  %v391_v10 = vld [vmem:[%s1516_s19 + $0x568] sm:$0xff] }
  0xe7   : > { %v1122_v20 = vpack.c.bf16 %v432_v12, %v430_v11  ;;  %v393_v11 = vld [vmem:[%s1516_s19 + $0x578] sm:$0xff]  ;;  %v455_v12 = vld [vmem:[%s1516_s19 + $0x768] sm:$0xff] }
  0xeb   : > { %548 = vmatmul.mubr.f32.vlgmr.msra.gmra.mrb[0].mxu0 %v1578_v14 }
  0xec   : > { %619 = vmatmul.mubr.f32.vlgmr.msra.gmra.mrb[0].mxu1 %v1578_v14  ;;  %1039 = vmatpush1.bf16.xpose.msra.mxu0 %v1038_v22  ;;  %v1124_v22 = vpack.c.bf16 %v437_v18, %v435_v17  ;;  %v1080_v18 = vpack.c.bf16 %v393_v11, %v391_v10 }
  0xed   : > { %1103 = vmatpush1.bf16.xpose.msra.mxu1 %v1102_v23  ;;  %1041 = vmatprep.subr.bf16.mxu0 %v1040_v24  ;;  %v370_v23 = vld [vmem:[%s1516_s19 + $0x4c0] sm:$0xff]  ;;  %v372_v24 = vld [vmem:[%s1516_s19 + $0x4d0] sm:$0xff] }
  0xee   : > { %1105 = vmatprep.subr.bf16.mxu1 %v1104_v25  ;;  %689 = vmatprep.mubr.f32.mxu0 %v1582_v15  ;;  %v434_v25 = vld [vmem:[%s1516_s19 + $0x6c0] sm:$0xff]  ;;  %v1062_v31 = vpack.c.bf16 %v372_v24, %v370_v23  ;;  %v456_v23 = vld [vmem:[%s1516_s19 + $0x770] sm:$0xff]  ;;  %v395_v24 = vld [vmem:[%s1516_s19 + $0x588] sm:$0xff] }
  0xef   : > { %760 = vmatprep.mubr.f32.mxu1 %v1582_v15  ;;  %v361_v15 = vld [vmem:[%s1516_s19 + $0x478] sm:$0xff]  ;;  %v1126_v32 = vpack.c.bf16 %v436_v26, %v434_v25  ;;  %v459_v26 = vld [vmem:[%s1516_s19 + $0x788] sm:$0xff] }
  0xf0   : > { %v1048_v47 = vpack.c.bf16 %v361_v15, %v359_v42  ;;  %v445_v42 = vld [vmem:[%s1516_s19 + $0x718] sm:$0xff] }
  0xf1   : > { %v397_v25 = vld [vmem:[%s1516_s19 + $0x598] sm:$0xff] }
  0xf4   : > { %1043 = vmatpush1.bf16.xpose.msra.mxu0 %v1042_v34  ;;  %v1128_v34 = vpack.c.bf16 %v441_v30, %v439_v29  ;;  %v1084_v30 = vpack.c.bf16 %v397_v25, %v395_v24 }
  0xf5   : > { %1107 = vmatpush1.bf16.xpose.msra.mxu1 %v1106_v35  ;;  %1045 = vmatprep.subr.bf16.mxu0 %v1044_v36  ;;  %v374_v35 = vld [vmem:[%s1516_s19 + $0x4e0] sm:$0xff]  ;;  %v376_v36 = vld [vmem:[%s1516_s19 + $0x4f0] sm:$0xff] }
  0xf6   : > { %1109 = vmatprep.subr.bf16.mxu1 %v1108_v37  ;;  %v438_v37 = vld [vmem:[%s1516_s19 + $0x6e0] sm:$0xff]  ;;  %v1066_v15 = vpack.c.bf16 %v376_v36, %v374_v35  ;;  %v460_v35 = vld [vmem:[%s1516_s19 + $0x790] sm:$0xff]  ;;  %v399_v36 = vld [vmem:[%s1516_s19 + $0x5a8] sm:$0xff] }
  0xf7   : > { %v1130_v43 = vpack.c.bf16 %v440_v38, %v438_v37  ;;  %v401_v37 = vld [vmem:[%s1516_s19 + $0x5b8] sm:$0xff]  ;;  %v463_v38 = vld [vmem:[%s1516_s19 + $0x7a8] sm:$0xff] }
  0xfc   : > { %1047 = vmatpush1.bf16.xpose.msra.mxu0 %v1046_v45  ;;  %v1132_v45 = vpack.c.bf16 %v445_v42, %v443_v41  ;;  %v1088_v42 = vpack.c.bf16 %v401_v37, %v399_v36 }
  0xfd   : > { %1111 = vmatpush1.bf16.xpose.msra.mxu1 %v1110_v46  ;;  %1049 = vmatprep.subr.bf16.mxu0 %v1048_v47  ;;  %v378_v46 = vld [vmem:[%s1516_s19 + $0x500] sm:$0xff]  ;;  %v380_v47 = vld [vmem:[%s1516_s19 + $0x510] sm:$0xff] }
  0xfe   : > { %1113 = vmatprep.subr.bf16.mxu1 %v1112_v48  ;;  %v442_v48 = vld [vmem:[%s1516_s19 + $0x700] sm:$0xff]  ;;  %v1070_v54 = vpack.c.bf16 %v380_v47, %v378_v46  ;;  %v464_v46 = vld [vmem:[%s1516_s19 + $0x7b0] sm:$0xff]  ;;  %v403_v47 = vld [vmem:[%s1516_s19 + $0x5c8] sm:$0xff] }
  0xff   : > { %v1134_v55 = vpack.c.bf16 %v444_v49, %v442_v48  ;;  %v405_v48 = vld [vmem:[%s1516_s19 + $0x5d8] sm:$0xff]  ;;  %v467_v49 = vld [vmem:[%s1516_s19 + $0x7c8] sm:$0xff] }
 0x104   : > { %1051 = vmatpush1.bf16.xpose.msra.mxu0 %v1050_v57  ;;  %v1136_v57 = vpack.c.bf16 %v449_v53, %v447_v52  ;;  %v1092_v53 = vpack.c.bf16 %v405_v48, %v403_v47 }
 0x105   : > { %1115 = vmatpush1.bf16.xpose.msra.mxu1 %v1114_v58  ;;  %1053 = vmatprep.subr.bf16.mxu0 %v1052_v59  ;;  %v382_v58 = vld [vmem:[%s1516_s19 + $0x520] sm:$0xff]  ;;  %v384_v59 = vld [vmem:[%s1516_s19 + $0x530] sm:$0xff] }
 0x106   : > { %1117 = vmatprep.subr.bf16.mxu1 %v1116_v60  ;;  %v446_v60 = vld [vmem:[%s1516_s19 + $0x720] sm:$0xff]  ;;  %v1074_v2 = vpack.c.bf16 %v384_v59, %v382_v58  ;;  %v468_v58 = vld [vmem:[%s1516_s19 + $0x7d0] sm:$0xff]  ;;  %v407_v59 = vld [vmem:[%s1516_s19 + $0x5e8] sm:$0xff] }
 0x107   : > { %v1138_v3 = vpack.c.bf16 %v448_v61, %v446_v60  ;;  %v409_v60 = vld [vmem:[%s1516_s19 + $0x5f8] sm:$0xff]  ;;  %v471_v61 = vld [vmem:[%s1516_s19 + $0x7e8] sm:$0xff] }
 0x10c   : > { %1055 = vmatpush1.bf16.xpose.msra.mxu0 %v1054_v5  ;;  %v1140_v5 = vpack.c.bf16 %v453_v1, %v451_v0  ;;  %v1096_v1 = vpack.c.bf16 %v409_v60, %v407_v59 }
 0x10d   : > { %1119 = vmatpush1.bf16.xpose.msra.mxu1 %v1118_v6  ;;  %1057 = vmatprep.subr.bf16.mxu0 %v1056_v7  ;;  %v386_v6 = vld [vmem:[%s1516_s19 + $0x540] sm:$0xff]  ;;  %v388_v7 = vld [vmem:[%s1516_s19 + $0x550] sm:$0xff] }
 0x10e   : > { %1121 = vmatprep.subr.bf16.mxu1 %v1120_v8  ;;  %v450_v8 = vld [vmem:[%s1516_s19 + $0x740] sm:$0xff]  ;;  %v1078_v16 = vpack.c.bf16 %v388_v7, %v386_v6  ;;  %v472_v6 = vld [vmem:[%s1516_s19 + $0x7f0] sm:$0xff] }
 0x10f   : > { %v1142_v17 = vpack.c.bf16 %v452_v9, %v450_v8  ;;  %v478_v9 = vpop.permute.xlu0 %477 }
 0x114   : > { %1059 = vmatpush1.bf16.xpose.msra.mxu0 %v1058_v19  ;;  %v1144_v19 = vpack.c.bf16 %v457_v13, %v455_v12 }
 0x115   : > { %1123 = vmatpush1.bf16.xpose.msra.mxu1 %v1122_v20  ;;  %1061 = vmatprep.subr.bf16.mxu0 %v1060_v21  ;;  %v390_v20 = vld [vmem:[%s1516_s19 + $0x560] sm:$0xff]  ;;  %v392_v21 = vld [vmem:[%s1516_s19 + $0x570] sm:$0xff] }
 0x116   : > { %1125 = vmatprep.subr.bf16.mxu1 %v1124_v22  ;;  %v454_v22 = vld [vmem:[%s1516_s19 + $0x760] sm:$0xff]  ;;  %v1082_v28 = vpack.c.bf16 %v392_v21, %v390_v20 }
 0x117   : > { %v1146_v29 = vpack.c.bf16 %v456_v23, %v454_v22 }
 0x11c   : > { %1063 = vmatpush1.bf16.xpose.msra.mxu0 %v1062_v31  ;;  %v1148_v31 = vpack.c.bf16 %v461_v27, %v459_v26 }
 0x11d   : > { %1127 = vmatpush1.bf16.xpose.msra.mxu1 %v1126_v32  ;;  %1065 = vmatprep.subr.bf16.mxu0 %v1064_v33  ;;  %v394_v32 = vld [vmem:[%s1516_s19 + $0x580] sm:$0xff]  ;;  %v396_v33 = vld [vmem:[%s1516_s19 + $0x590] sm:$0xff] }
 0x11e   : > { %1129 = vmatprep.subr.bf16.mxu1 %v1128_v34  ;;  %v458_v34 = vld [vmem:[%s1516_s19 + $0x780] sm:$0xff]  ;;  %v1086_v40 = vpack.c.bf16 %v396_v33, %v394_v32 }
 0x11f   : > { %v1150_v41 = vpack.c.bf16 %v460_v35, %v458_v34 }
 0x124   : > { %1067 = vmatpush1.bf16.xpose.msra.mxu0 %v1066_v15  ;;  %v1152_v15 = vpack.c.bf16 %v465_v39, %v463_v38 }
 0x125   : > { %1131 = vmatpush1.bf16.xpose.msra.mxu1 %v1130_v43  ;;  %1069 = vmatprep.subr.bf16.mxu0 %v1068_v44  ;;  %v398_v43 = vld [vmem:[%s1516_s19 + $0x5a0] sm:$0xff]  ;;  %v400_v44 = vld [vmem:[%s1516_s19 + $0x5b0] sm:$0xff] }
 0x126   : > { %1133 = vmatprep.subr.bf16.mxu1 %v1132_v45  ;;  %v462_v45 = vld [vmem:[%s1516_s19 + $0x7a0] sm:$0xff]  ;;  %v1090_v51 = vpack.c.bf16 %v400_v44, %v398_v43 }
 0x127   : > { %v1154_v52 = vpack.c.bf16 %v464_v46, %v462_v45 }
 0x12c   : > { %1071 = vmatpush1.bf16.xpose.msra.mxu0 %v1070_v54  ;;  %v1156_v54 = vpack.c.bf16 %v469_v50, %v467_v49 }
 0x12d   : > { %1135 = vmatpush1.bf16.xpose.msra.mxu1 %v1134_v55  ;;  %1073 = vmatprep.subr.bf16.mxu0 %v1072_v56  ;;  %v402_v55 = vld [vmem:[%s1516_s19 + $0x5c0] sm:$0xff]  ;;  %v404_v56 = vld [vmem:[%s1516_s19 + $0x5d0] sm:$0xff] }
 0x12e   : > { %1137 = vmatprep.subr.bf16.mxu1 %v1136_v57  ;;  %v466_v57 = vld [vmem:[%s1516_s19 + $0x7c0] sm:$0xff]  ;;  %v1094_v63 = vpack.c.bf16 %v404_v56, %v402_v55 }
 0x12f   : > { %v1158_v0 = vpack.c.bf16 %v468_v58, %v466_v57 }
 0x134   : > { %1075 = vmatpush1.bf16.xpose.msra.mxu0 %v1074_v2  ;;  %v1160_v2 = vpack.c.bf16 %v473_v62, %v471_v61 }
 0x135   : > { %1139 = vmatpush1.bf16.xpose.msra.mxu1 %v1138_v3  ;;  %1077 = vmatprep.subr.bf16.mxu0 %v1076_v4  ;;  %v406_v3 = vld [vmem:[%s1516_s19 + $0x5e0] sm:$0xff]  ;;  %v408_v4 = vld [vmem:[%s1516_s19 + $0x5f0] sm:$0xff] }
 0x136   : > { %1141 = vmatprep.subr.bf16.mxu1 %v1140_v5  ;;  %v470_v5 = vld [vmem:[%s1516_s19 + $0x7e0] sm:$0xff]  ;;  %v1098_v7 = vpack.c.bf16 %v408_v4, %v406_v3 }
 0x137   : > { %v1162_v8 = vpack.c.bf16 %v472_v6, %v470_v5 }
 0x13c   : > { %1079 = vmatpush1.bf16.xpose.msra.mxu0 %v1078_v16 }
 0x13d   : > { %1143 = vmatpush1.bf16.xpose.msra.mxu1 %v1142_v17  ;;  %1081 = vmatprep.subr.bf16.mxu0 %v1080_v18 }
 0x13e   : > { %1145 = vmatprep.subr.bf16.mxu1 %v1144_v19 }
 0x144   : > { %1083 = vmatpush1.bf16.xpose.msra.mxu0 %v1082_v28 }
 0x145   : > { %1147 = vmatpush1.bf16.xpose.msra.mxu1 %v1146_v29  ;;  %1085 = vmatprep.subr.bf16.mxu0 %v1084_v30 }
 0x146   : > { %1149 = vmatprep.subr.bf16.mxu1 %v1148_v31 }
 0x14c   : > { %1087 = vmatpush1.bf16.xpose.msra.mxu0 %v1086_v40 }
 0x14d   : > { %1151 = vmatpush1.bf16.xpose.msra.mxu1 %v1150_v41  ;;  %1089 = vmatprep.subr.bf16.mxu0 %v1088_v42 }
 0x14e   : > { %1153 = vmatprep.subr.bf16.mxu1 %v1152_v15 }
 0x154   : > { %1091 = vmatpush1.bf16.xpose.msra.mxu0 %v1090_v51 }
 0x155   : > { %1155 = vmatpush1.bf16.xpose.msra.mxu1 %v1154_v52  ;;  %1093 = vmatprep.subr.bf16.mxu0 %v1092_v53 }
 0x156   : > { %1157 = vmatprep.subr.bf16.mxu1 %v1156_v54 }
 0x15c   : > { %1095 = vmatpush1.bf16.xpose.msra.mxu0 %v1094_v63 }
 0x15d   : > { %1159 = vmatpush1.bf16.xpose.msra.mxu1 %v1158_v0  ;;  %1097 = vmatprep.subr.bf16.mxu0 %v1096_v1 }
 0x15e   : > { %1161 = vmatprep.subr.bf16.mxu1 %v1160_v2 }
 0x164   : > { %1099 = vmatpush1.bf16.xpose.msra.mxu0 %v1098_v7 }
 0x165   : > { %1163 = vmatpush1.bf16.xpose.msra.mxu1 %v1162_v8 }
 0x16b   : > { %690 = vmatmul.mubr.f32.vlgmr.msra.gmra.mrb[2].mxu0 %v1578_v14 }
 0x16c   : > { %761 = vmatmul.mubr.f32.vlgmr.msra.gmra.mrb[2].mxu1 %v1578_v14 }
 0x1be   : > { %v549_v10 = vpop.f32.mrb[0].mxu0 }
 0x1bf   : > { %v620_v11 = vpop.f32.mrb[0].mxu1  ;;  %v550_v12 = vadd.f32 %v549_v10, %v478_v9  ;;  %v551_v13 = vpop.f32.mrb[1].mxu0 }
 0x1c0   : > { %v552_v16 = vadd.f32 %v551_v13, %v478_v9  ;;  %v621_v17 = vadd.f32 %v620_v11, %v478_v9  ;;  %v622_v18 = vpop.f32.mrb[1].mxu1 }
 0x1c1   : > { %v623_v19 = vadd.f32 %v622_v18, %v478_v9 }
 0x1c2   : > { %v775_v20 = vcombine.low %v550_v12, %v552_v16 }
 0x1c3   : > { %v776_v21 = vcombine.low %v621_v17, %v623_v19 }
 0x1c4   : > { %783 = vst [vmem:[%s209_s4] sm:$0x77] %v775_v20 }
 0x1c5   : > { %784 = vst [vmem:[%s209_s4 + $0x8] sm:$0x77] %v776_v21 }
 0x23e   : > { %v691_v22 = vpop.f32.mrb[2].mxu0 }
 0x23f   : > { %v692_v23 = vadd.f32 %v691_v22, %v478_v9  ;;  %v762_v14 = vpop.f32.mrb[2].mxu1  ;;  %v693_v24 = vpop.f32.mrb[3].mxu0 }
 0x240   : > { %v763_v25 = vadd.f32 %v762_v14, %v478_v9  ;;  %v694_v26 = vadd.f32 %v693_v24, %v478_v9  ;;  %v764_v27 = vpop.f32.mrb[3].mxu1 }
 0x241   : > { %v765_v28 = vadd.f32 %v764_v27, %v478_v9 }
 0x242   : > { %v777_v29 = vcombine.low %v692_v23, %v694_v26 }
 0x243   : > { %v778_v30 = vcombine.low %v763_v25, %v765_v28 }
 0x244   : > { %785 = vst [vmem:[%s209_s4 + $0x10] sm:$0x77] %v777_v29 }
 0x245   : > { %786 = vst [vmem:[%s209_s4 + $0x18] sm:$0x77] %v778_v30 }
 0x246   : > { %1289 = shalt.err (!%p1286_p13)
}
 0x247   : > { %s1290_s7 = scalar_lea.hbm %s1804_s30, 512  ;;  %s1294_s17 = scalar_lea.hbm %s1851_s3, 1024 }
 0x248   : > { %p1291_p2 = scmp.ne.s32.totalorder %s1804_s30, %s1290_s7  ;;  %p1295_p5 = scmp.lt.u32.totalorder %s1804_s30, %s1851_s3 }
 0x249   : > { %p1296_p8 = scmp.lt.u32.totalorder %s1294_s17, %s1290_s7  ;;  %p1298_p1 = scmp.lt.u32.totalorder %s1290_s7, %s1804_s30 }
 0x24a   : > { %p1292_p12 = pnand %p1291_p2, %p1867_p10 }
 0x24b   : > { %p1297_p9 = por %p1296_p8, %p1295_p5 }
 0x24c   : > { %p1293_p3 = pneg %p1292_p12 }
 0x24d   : > { %p1299_p7 = por %p1298_p1, %p1297_p9 }
 0x24f   : > { %p1300_p4 = pnand %p1299_p7, %p1293_p3 }
 0x251   : > { %1303 = shalt.err (!%p1300_p4)
}
 0x252   : > { %1169 = dma.vmem_to_hbm [thread:$0]  (%p1867_p10), %s1806_s9, 512, %s1804_s30, %s788_s28  }
 0x253 PF: > { %s814_s26 = sand.u32 1, %s1334_s12   ;;  %p1868_p6 = scmp.ne.s32.totalorder %s1859_s25, 0 }
 0x254   : > { %s815_s29 = scalar_lea.sflag [#allocation4], %s814_s26 }
 0x255   : > { %p1176_p11 = pnand %p885_p0, %p1868_p6 }
 0x257   : > { %1329 = dma.done.wait (!%p1176_p11), %s815_s29, 512  }
 0x258   : > { %1331 = vsyncadd (!%p1176_p11), %s815_s29, 4294966784  ;;  %p17_p13 = scmp.ge.s32.totalorder %s1399_s18, 4   ;;  %s1869_s12 = smov %s1338_s13 }
 0x259   : > { %s1870_s13 = smov %s1342_s14  ;;  %s1871_s14 = smov %s1411_s21 }
 0x25a   : > { %s1872_s15 = smov %s1399_s18  ;;  %19 = sbr.rel (!%p17_p13) target bundleno = 6 (0x6), region = 81 }
 0x261   :  { %820 = vsyncpa [#allocation3], 1 }
 0x262   :  { %822 = vsyncpa [#allocation3 + $0x1], 1 }
 0x263   :  { %823 = vsyncpa [#allocation6], 1 }
 0x264   :  { %824 = vsyncpa [#allocation4], 1 }
 0x265   :  { %826 = vsyncpa [#allocation4 + $0x1], 1 }

</bundles_post_ra>
